<compile_context>
chip_gen: v7x
topology: tpu7x:2x2x1
jax: 0.10.0
libtpu: 0.0.40
codegen_flags: <defaults>
</compile_context>

<pallas_src>
import functools

import jax
import jax.numpy as jnp
from jax.experimental import pallas as pl
from jax.experimental.pallas import tpu as pltpu

NUM_LAYERS = 3          # number of middle Linear(5, 5) layers
INPUT_SIZE = 32         # total number of elements of x after .view(-1)
HIDDEN = 5
OUT = 2


def _affine_kernel(input_size, x_ref, p_ref, o_ref):
    """y = x @ W_eff + b_eff, computed on the VPU + one lane reduction.

    x_ref : (1, input_size)        f32   flattened input as a row vector
    p_ref : (OUT, input_size + 1)  f32   rows are W_eff^T; last column is b_eff
    o_ref : (OUT, 1)               f32
    """
    p = p_ref[...]                         # single tiny VMEM load (one vreg tile)
    w_t = p[:, :input_size]                # (OUT, input_size)
    b = p[:, input_size:]                  # (OUT, 1)
    # sublane-broadcast (1, K) against (OUT, K), then reduce along lanes (XLU).
    prod = x_ref[...] * w_t                # (OUT, input_size)
    o_ref[...] = jnp.sum(prod, axis=-1, keepdims=True) + b


def fold_params(params):
    """Fold the activation-free Linear chain into one packed affine map.

    Exact (no nonlinearity between layers). Done once outside the kernel;
    returns a (OUT, input_size + 1) buffer: [W_eff^T | b_eff^T].
    """
    w1, b1, wm, bm, wo, bo = params
    W = w1                                  # (input_size, HIDDEN)
    b = b1                                  # (1, HIDDEN)
    for i in range(wm.shape[0]):
        W = W @ wm[i]
        b = b @ wm[i] + bm[i]
    W = W @ wo                              # (input_size, OUT)
    b = b @ wo + bo                         # (1, OUT)
    return jnp.concatenate([W.T, b.T], axis=1).astype(jnp.float32)  # (OUT, K+1)


def test_net_forward(x, packed_params):
    """JAX/Pallas equivalent of test_net.forward. Returns shape (OUT,)."""
    xf = x.reshape(1, -1).astype(jnp.float32)       # x.view(-1) as a row vector
    k = xf.shape[1]
    assert packed_params.shape == (OUT, k + 1), packed_params.shape

    kernel = functools.partial(_affine_kernel, k)
    vmem = pl.BlockSpec(memory_space=pltpu.MemorySpace.VMEM)
    out = pl.pallas_call(
        kernel,
        out_shape=jax.ShapeDtypeStruct((OUT, 1), jnp.float32),
        in_specs=[vmem, vmem],
        out_specs=vmem,
    )(xf, packed_params)
    return out.reshape(OUT)


def init_params(key, num_layers=NUM_LAYERS, input_size=INPUT_SIZE):
    """Deterministic init mimicking torch.nn.Linear (U[-1/sqrt(fan_in), +])."""
    ks = jax.random.split(key, 6)

    def u(k, shape, fan_in):
        bound = 1.0 / jnp.sqrt(jnp.float32(fan_in))
        return jax.random.uniform(k, shape, jnp.float32, -bound, bound)

    # Stored directly as (in, out) so layer i computes h @ W (== h @ W_torch.T).
    w1 = u(ks[0], (input_size, HIDDEN), input_size)
    b1 = u(ks[1], (1, HIDDEN), input_size)
    wm = u(ks[2], (num_layers, HIDDEN, HIDDEN), HIDDEN)
    bm = u(ks[3], (num_layers, 1, HIDDEN), HIDDEN)
    wo = u(ks[4], (HIDDEN, OUT), HIDDEN)
    bo = u(ks[5], (1, OUT), HIDDEN)
    return (w1, b1, wm, bm, wo, bo)


def _reference_forward(x, params, num_layers=NUM_LAYERS):
    """Pure-JAX per-layer reference (mirrors the PyTorch module exactly)."""
    w1, b1, wm, bm, wo, bo = params
    h = x.reshape(1, -1).astype(jnp.float32) @ w1 + b1
    for i in range(num_layers):
        h = h @ wm[i] + bm[i]
    return (h @ wo + bo).reshape(OUT)


if __name__ == "__main__":
    key = jax.random.PRNGKey(0)
    kx, kp = jax.random.split(key)

    # Any shape whose total element count equals INPUT_SIZE (forward flattens).
    x = jax.random.normal(kx, (2, 16), dtype=jnp.float32)   # 2*16 == 32
    params = init_params(kp)

    packed = fold_params(params)          # one-time fold; exact (no activations)
    out = test_net_forward(x, packed)
    out = jax.block_until_ready(out)

    ref = _reference_forward(x, params)
    assert out.shape == (OUT,)
    assert jnp.allclose(out, ref, atol=1e-5, rtol=1e-5), (out, ref)

    print("KERNEL_OK")
</pallas_src>

<mosaic_0001>
module attributes {stable_mosaic.version = 11 : i64} {
  func.func @_affine_kernel(%arg0: memref<1x32xf32, #tpu.memory_space<vmem>>, %arg1: memref<2x33xf32, #tpu.memory_space<vmem>>, %arg2: memref<2x1xf32, #tpu.memory_space<vmem>>) attributes {dimension_semantics = [], scalar_prefetch = 0 : i64, scratch_operands = 0 : i64, tpu.core_type = #tpu.core_type<tc>} {
    %c0 = arith.constant 0 : index
    %c0_0 = arith.constant 0 : index
    %0 = vector.load %arg1[%c0, %c0_0] : memref<2x33xf32, #tpu.memory_space<vmem>>, vector<2x33xf32>
    %1 = vector.extract_strided_slice %0 {offsets = [0, 0], sizes = [2, 32], strides = [1, 1]} : vector<2x33xf32> to vector<2x32xf32>
    %2 = vector.extract_strided_slice %0 {offsets = [0, 32], sizes = [2, 1], strides = [1, 1]} : vector<2x33xf32> to vector<2x1xf32>
    %c0_1 = arith.constant 0 : index
    %c0_2 = arith.constant 0 : index
    %3 = vector.load %arg0[%c0_1, %c0_2] : memref<1x32xf32, #tpu.memory_space<vmem>>, vector<1x32xf32>
    %4 = vector.broadcast %3 : vector<1x32xf32> to vector<2x32xf32>
    %5 = arith.mulf %4, %1 : vector<2x32xf32>
    %cst = arith.constant dense<0.000000e+00> : vector<2xf32>
    %6 = vector.multi_reduction <add>, %5, %cst [1] : vector<2x32xf32> to vector<2xf32>
    %7 = vector.shape_cast %6 : vector<2xf32> to vector<2x1xf32>
    %8 = arith.addf %7, %2 : vector<2x1xf32>
    %c0_3 = arith.constant 0 : index
    %c0_4 = arith.constant 0 : index
    %9 = vector.load %arg2[%c0_3, %c0_4] : memref<2x1xf32, #tpu.memory_space<vmem>>, vector<2x1xf32>
    tpu.vector_store %arg2[%c0_3, %c0_4], %8 {strides = array<i32>} : memref<2x1xf32, #tpu.memory_space<vmem>>, vector<2x1xf32>,
    return
  }
}

</mosaic_0001>

<bundles_post_ra>
// kernel: tpu_custom_call.1
= control target key start
LH: loop header
LB: loop body
LE: loop exit
PB: predicated region body
PF: predicated region fallthrough
CT: control target
= control target key end

     0   :  { %7 = vsyncpa [#allocation3], 0  ;;  %s75_s9 = smov [#allocation2]   ;;  %s110_s0 = inlined_call_operand.hbm [shape: f32[1,32], index: 0, kind: input, shape index: {}]   ;;  %s111_s1 = inlined_call_operand.vmem [shape: f32[2,33], index: 1, kind: input, shape index: {}]   ;;  %s112_s2 = inlined_call_operand.vmem [shape: f32[2,1], index: 2, kind: output, shape index: {}]  }
   0x1   :  { %s14_s10 = sshll.u32 %s75_s9, 4  ;;  %s51_s13 = scalar_lea.hbm %s110_s0, 16  ;;  %s15_s10 = int_to_ptr.vmem [resolvable:$true] %s14_s10 }
   0x2   :  { %p52_p0 = scmp.ne.s32.totalorder %s110_s0, %s51_s13  ;;  %p55_p1 = scmp.lt.u32.totalorder %s51_s13, %s110_s0 }
   0x4   :  { %p57_p2 = pnand %p55_p1, %p52_p0 }
   0x6   :  { %60 = shalt.err (!%p57_p2)
}
   0x7   :  { %s61_s18 = scalar_lea.vmem %s15_s10, 16  ;;  %s65_s19 = scalar_lea.vmem %s15_s10, 32 }
   0x8   :  { %p62_p3 = scmp.ne.s32.totalorder %s15_s10, %s61_s18  ;;  %p66_p4 = scmp.lt.s32.totalorder %s15_s10, %s15_s10 }
   0x9   :  { %p67_p5 = scmp.lt.s32.totalorder %s65_s19, %s61_s18 }
   0xb   :  { %p68_p6 = por %p67_p5, %p66_p4 }
   0xd   :  { %p69_p7 = pnand %p68_p6, %p62_p3 }
   0xf   :  { %72 = shalt.err (!%p69_p7)
}
  0x10   :  { %17 = dma.hbm_to_vmem [thread:$0]  %s110_s0, 16, %s15_s10, [#allocation3]  }
  0x11   :  { %73 = dma.done.wait [#allocation3], 16  }
  0x12   :  { %74 = vsyncadd [#allocation3], 4294967280  ;;  %v23_v0 = vld [vmem:[%s111_s1] sm:$0x3]  ;;  %vm32_vm0 = vcmask 254976   ;;  %s76_s24 = smov 96  }
  0x13   :  { %v48_v1 = vld [vmem:[#allocation2] ss:$0 sm:$0xff]  ;;  %vm41_vm1 = vcmask 1024  }
  0x14   :  { %v31_v2 = vmul.f32 %v48_v1, %v23_v0 }
  0x16   :  { %v33_v3 = vsel %vm32_vm0, %v31_v2, 0.0 }
  0x17   :  { %34 = vadd.xlane.f32.xlu0 %v33_v3 }
  0xa4   :  { %v35_v4 = vpop.xlane.xlu0 %34 }
  0xa5   :  { %v36_v5 = vadd.f32 %v35_v4, %v23_v0 }
  0xa7   :  { %38 = vrot.lane.b32.xlu0 %v36_v5, %s76_s24 }
 0x119   :  { %v39_v6 = vpop.permute.xlu0 %38 }
 0x11a   :  { %42 = vst.msk [vmem:[%s112_s2] sm:$0x3] %vm41_vm1, %v39_v6 }
 0x11b   :  { %47 = vsyncpa [#allocation3], 1 }

</bundles_post_ra>
